<compile_context>
chip_gen: v7x
topology: tpu7x:2x2x1
jax: 0.10.0
libtpu: 0.0.40
codegen_flags: <defaults>
</compile_context>

<pallas_src>
import functools

import jax
import jax.numpy as jnp
from jax import lax
from jax.experimental import pallas as pl
from jax.experimental.pallas import tpu as pltpu

ALPHA = 0.5
BETA = 0.5
TEMPERATURE = 1.0

_SUBLANE_F32 = 8
_MAX_BATCH_TILE = 4096


def _cdiv(a, b):
    return (a + b - 1) // b


def _round_up(x, m):
    return ((x + m - 1) // m) * m


def _vmem_capacity_bytes():
    """Physical per-TensorCore VMEM; conservative fallback if unqueryable."""
    try:
        return int(pltpu.get_tpu_info().vmem_capacity_bytes)
    except Exception:
        return 64 * 1024 * 1024  # v7x per-TC size -> safe on every generation


def _vmem_plan():
    """Returns (tile budget bytes, scoped vmem_limit_bytes) for this chip."""
    phys = _vmem_capacity_bytes()
    budget = min(phys // 2, 64 * 1024 * 1024)            # v5e/v6e: 64 MiB, v7x: 32 MiB
    vmem_limit = min(phys - (16 << 20), budget + (24 << 20))
    vmem_limit = max(vmem_limit, budget)                  # never below the budget
    return budget, vmem_limit


def _auto_batch_tile(num_features, sublane, budget_bytes):
    """Largest sublane-aligned batch tile whose pipeline buffers + f32
    temporaries fit the VMEM budget.

    Sizing: ~4 pipeline buffers (2 inputs x double-buffer) + ~6 live f32
    temporaries -> ~10 f32 rows of `num_features` per batch row.
    """
    bytes_per_row = max(num_features, 1) * 4 * 10
    bt = budget_bytes // bytes_per_row
    bt = max(sublane, min(_MAX_BATCH_TILE, bt))
    return (bt // sublane) * sublane


def _loss_kernel(v1_ref, v2_ref, out_ref, *, inv_temperature, batch, block_rows):
    """Per-batch-tile hot path.

    Inputs:  (bt, F) tiles of v1, v2 (feature axis is the full extent).
    Output:  (1, 2) per-tile partial sums:
       lane 0: sum_rows sum_f (w*v1 - v1)^2
       lane 1: sum_rows sum_f  w*|v1 - v2|
    """
    v1 = v1_ref[...].astype(jnp.float32)                 # (bt, F)
    v2 = v2_ref[...].astype(jnp.float32)                 # (bt, F)

    diff = jnp.abs(v1 - v2)                              # |v1 - v2|
    logits = diff * (-inv_temperature)                   # -diff / temperature

    # Numerically-stable softmax along features (dim=-1).
    m = jnp.max(logits, axis=-1, keepdims=True)          # (bt, 1)
    e = jnp.exp(logits - m)                              # (bt, F)
    denom = jnp.sum(e, axis=-1, keepdims=True)           # (bt, 1)
    inv_denom = pl.reciprocal(denom, approx=False)       # EUP; exact for 1e-5 tol
    w = e * inv_denom                                    # softmax weights

    # (w*v1 - v1)^2 == (v1 * (w - 1))^2 ; factor inv_denom out of the diff sum.
    common_rows = jnp.sum((v1 * (w - 1.0)) ** 2, axis=-1, keepdims=True)   # (bt,1)
    diff_rows = jnp.sum(e * diff, axis=-1, keepdims=True) * inv_denom      # (bt,1)

    if batch % block_rows != 0:
        # Tail tile: rows past the true batch hold unspecified values.
        # Every op above is row-independent, so masking the per-row sums is
        # exact (even if a garbage row produced inf/NaN it is discarded here).
        row = lax.broadcasted_iota(jnp.int32, common_rows.shape, 0)
        valid = (pl.program_id(0) * block_rows + row) < batch
        common_rows = jnp.where(valid, common_rows, 0.0)
        diff_rows = jnp.where(valid, diff_rows, 0.0)

    common_sum = jnp.sum(common_rows, axis=0, keepdims=True)   # (1, 1)
    diff_sum = jnp.sum(diff_rows, axis=0, keepdims=True)       # (1, 1)
    out_ref[...] = jnp.concatenate([common_sum, diff_sum], axis=-1)   # (1, 2)


def softmax_threshold_loss(v1, v2, *, alpha=ALPHA, beta=BETA,
                           temperature=TEMPERATURE, batch_tile=None):
    """Pallas implementation of SoftmaxThresholdLoss.forward.

    Returns (total_loss, common_loss, difference_loss) as float32 scalars.
    """
    assert v1.shape == v2.shape and v1.ndim == 2
    B, F = v1.shape

    # Sublane rounding adapts to the stored dtype (f32->8, bf16->16, 1B->32).
    itemsize = jnp.dtype(v1.dtype).itemsize
    sublane = _SUBLANE_F32 * max(1, 4 // itemsize)

    budget_bytes, vmem_limit_bytes = _vmem_plan()

    if batch_tile is None:
        bt = _auto_batch_tile(F, sublane, budget_bytes)
    else:
        bt = _round_up(max(int(batch_tile), 1), sublane)
    # Guarantee >= 2 grid tiles whenever B allows it (v7x megacore sharding of
    # the "parallel" grid axis) and avoid over-sizing tiny batches.
    bt = min(bt, _round_up(_cdiv(B, 2), sublane))
    bt = max(bt, sublane)

    num_tiles = _cdiv(B, bt)

    kernel = functools.partial(
        _loss_kernel,
        inv_temperature=float(1.0 / temperature),
        batch=B,
        block_rows=bt,
    )

    parts = pl.pallas_call(
        kernel,
        out_shape=jax.ShapeDtypeStruct((num_tiles, 1, 2), jnp.float32),
        grid_spec=pltpu.PrefetchScalarGridSpec(
            num_scalar_prefetch=0,
            grid=(num_tiles,),
            in_specs=[
                # Feature axis is a full-extent block (exempt from the 128
                # divisibility rule) -> no wrapper-side padding/HBM copy.
                pl.BlockSpec((bt, F), lambda i: (i, 0)),
                pl.BlockSpec((bt, F), lambda i: (i, 0)),
            ],
            out_specs=pl.BlockSpec((None, 1, 2), lambda i: (i, 0, 0)),
        ),
        compiler_params=pltpu.CompilerParams(
            dimension_semantics=("parallel",),
            vmem_limit_bytes=int(vmem_limit_bytes),
        ),
    )(v1, v2)

    # Cheap scalar glue: reduce per-tile partials, mean over the true batch,
    # weighted combination.
    common_loss = jnp.sum(parts[:, 0, 0]) / B
    difference_loss = jnp.sum(parts[:, 0, 1]) / B
    total_loss = alpha * common_loss + beta * difference_loss
    return total_loss, common_loss, difference_loss


def _reference(v1, v2, alpha=ALPHA, beta=BETA, temperature=TEMPERATURE):
    diff = jnp.abs(v1 - v2)
    w = jax.nn.softmax(-diff / temperature, axis=-1)
    common = w * v1
    common_loss = jnp.mean(jnp.sum((common - v1) ** 2, axis=1))
    difference_loss = jnp.mean(jnp.sum(w * diff, axis=1))
    total = alpha * common_loss + beta * difference_loss
    return total, common_loss, difference_loss


if __name__ == "__main__":
    key = jax.random.PRNGKey(0)
    # Aligned and unaligned shapes: exercises both the mask-free fast path and
    # the batch-tail / non-128 feature path (no host-side padding either way).
    for (B, F) in [(16, 32), (13, 37)]:
        key, k1, k2 = jax.random.split(key, 3)
        v1 = jax.random.normal(k1, (B, F), dtype=jnp.float32)
        v2 = jax.random.normal(k2, (B, F), dtype=jnp.float32)

        total, common, different = softmax_threshold_loss(v1, v2)
        jax.block_until_ready((total, common, different))

        ref_total, ref_common, ref_diff = _reference(v1, v2)
        assert jnp.allclose(total, ref_total, rtol=1e-5, atol=1e-5)
        assert jnp.allclose(common, ref_common, rtol=1e-5, atol=1e-5)
        assert jnp.allclose(different, ref_diff, rtol=1e-5, atol=1e-5)

    print("KERNEL_OK")
</pallas_src>

<mosaic_0001>
module attributes {stable_mosaic.version = 11 : i64} {
  func.func @_loss_kernel(%arg0: i32, %arg1: memref<8x32xf32, #tpu.memory_space<vmem>>, %arg2: memref<8x32xf32, #tpu.memory_space<vmem>>, %arg3: memref<1x1x2xf32, #tpu.memory_space<vmem>>) attributes {dimension_semantics = [#tpu.dimension_semantics<parallel>], iteration_bounds = array<i64: 2>, scalar_prefetch = 0 : i64, scratch_operands = 0 : i64, tpu.core_type = #tpu.core_type<tc>, window_params = [{transform_indices = @transform_0, window_bounds = array<i64: 8, 32>}, {transform_indices = @transform_1, window_bounds = array<i64: 8, 32>}, {transform_indices = @transform_2, window_bounds = array<i64: 1, 1, 2>}]} {
    %c0 = arith.constant 0 : index
    %c0_0 = arith.constant 0 : index
    %0 = vector.load %arg1[%c0, %c0_0] : memref<8x32xf32, #tpu.memory_space<vmem>>, vector<8x32xf32>
    %c0_1 = arith.constant 0 : index
    %c0_2 = arith.constant 0 : index
    %1 = vector.load %arg2[%c0_1, %c0_2] : memref<8x32xf32, #tpu.memory_space<vmem>>, vector<8x32xf32>
    %2 = arith.subf %0, %1 : vector<8x32xf32>
    %3 = math.absf %2 : vector<8x32xf32>
    %cst = arith.constant -1.000000e+00 : f32
    %4 = vector.broadcast %cst : f32 to vector<8x32xf32>
    %5 = arith.mulf %3, %4 : vector<8x32xf32>
    %cst_3 = arith.constant dense<0xFF800000> : vector<8xf32>
    %6 = vector.multi_reduction <maximumf>, %5, %cst_3 [1] : vector<8x32xf32> to vector<8xf32>
    %7 = vector.shape_cast %6 : vector<8xf32> to vector<8x1xf32>
    %8 = vector.broadcast %7 : vector<8x1xf32> to vector<8x32xf32>
    %9 = arith.subf %5, %8 : vector<8x32xf32>
    %10 = math.exp %9 : vector<8x32xf32>
    %cst_4 = arith.constant dense<0.000000e+00> : vector<8xf32>
    %11 = vector.multi_reduction <add>, %10, %cst_4 [1] : vector<8x32xf32> to vector<8xf32>
    %12 = vector.shape_cast %11 : vector<8xf32> to vector<8x1xf32>
    %13 = tpu.reciprocal %12 : vector<8x1xf32> -> vector<8x1xf32>
    %14 = vector.broadcast %13 : vector<8x1xf32> to vector<8x32xf32>
    %15 = arith.mulf %10, %14 : vector<8x32xf32>
    %cst_5 = arith.constant 1.000000e+00 : f32
    %16 = vector.broadcast %cst_5 : f32 to vector<8x32xf32>
    %17 = arith.subf %15, %16 : vector<8x32xf32>
    %18 = arith.mulf %0, %17 : vector<8x32xf32>
    %19 = arith.mulf %18, %18 : vector<8x32xf32>
    %cst_6 = arith.constant dense<0.000000e+00> : vector<8xf32>
    %20 = vector.multi_reduction <add>, %19, %cst_6 [1] : vector<8x32xf32> to vector<8xf32>
    %21 = vector.shape_cast %20 : vector<8xf32> to vector<8x1xf32>
    %22 = arith.mulf %10, %3 : vector<8x32xf32>
    %cst_7 = arith.constant dense<0.000000e+00> : vector<8xf32>
    %23 = vector.multi_reduction <add>, %22, %cst_7 [1] : vector<8x32xf32> to vector<8xf32>
    %24 = vector.shape_cast %23 : vector<8xf32> to vector<8x1xf32>
    %25 = arith.mulf %24, %13 : vector<8x1xf32>
    %cst_8 = arith.constant dense<0.000000e+00> : vector<1xf32>
    %26 = vector.multi_reduction <add>, %21, %cst_8 [0] : vector<8x1xf32> to vector<1xf32>
    %27 = vector.shape_cast %26 : vector<1xf32> to vector<1x1xf32>
    %cst_9 = arith.constant dense<0.000000e+00> : vector<1xf32>
    %28 = vector.multi_reduction <add>, %25, %cst_9 [0] : vector<8x1xf32> to vector<1xf32>
    %29 = vector.shape_cast %28 : vector<1xf32> to vector<1x1xf32>
    %30 = tpu.concatenate %27, %29 in 1 : vector<1x1xf32>, vector<1x1xf32> -> vector<1x2xf32>
    %c0_10 = arith.constant 0 : index
    %c0_11 = arith.constant 0 : index
    %c0_12 = arith.constant 0 : index
    %31 = vector.load %arg3[%c0_10, %c0_11, %c0_12] : memref<1x1x2xf32, #tpu.memory_space<vmem>>, vector<1x1x2xf32>
    %32 = vector.shape_cast %31 : vector<1x1x2xf32> to vector<1x2xf32>
    %33 = vector.shape_cast %30 : vector<1x2xf32> to vector<1x1x2xf32>
    tpu.vector_store %arg3[%c0_10, %c0_11, %c0_12], %33 {strides = array<i32>} : memref<1x1x2xf32, #tpu.memory_space<vmem>>, vector<1x1x2xf32>,
    return
  }
  func.func @transform_0(%arg0: i32) -> (i32, i32) {
    %c0_i32 = arith.constant 0 : i32
    %c0_i32_0 = arith.constant 0 : i32
    return %arg0, %c0_i32 : i32, i32
  }
  func.func @transform_1(%arg0: i32) -> (i32, i32) {
    %c0_i32 = arith.constant 0 : i32
    %c0_i32_0 = arith.constant 0 : i32
    return %arg0, %c0_i32 : i32, i32
  }
  func.func @transform_2(%arg0: i32) -> (i32, i32, i32) {
    %c0_i32 = arith.constant 0 : i32
    %c0_i32_0 = arith.constant 0 : i32
    %c0_i32_1 = arith.constant 0 : i32
    return %arg0, %c0_i32, %c0_i32_0 : i32, i32, i32
  }
}

</mosaic_0001>

<bundles_post_ra>
// kernel: tpu_custom_call.1
= control target key start
LH: loop header
LB: loop body
LE: loop exit
PB: predicated region body
PF: predicated region fallthrough
CT: control target
= control target key end

     0   :  { %7 = vsyncpa [#allocation3], 0  ;;  %s774_s0 = inlined_call_operand.hbm [shape: f32[16,32], index: 0, kind: input, shape index: {}]   ;;  %s775_s1 = inlined_call_operand.hbm [shape: f32[16,32], index: 1, kind: input, shape index: {}]   ;;  %s776_s2 = inlined_call_operand.hbm [shape: f32[2,1,2], index: 2, kind: output, shape index: {}]  }
   0x1   :  { %9 = vsyncpa [#allocation3 + $0x1], 0 }
   0x2   :  { %10 = vsyncpa [#allocation6], 0 }
   0x3   :  { %12 = vsyncpa [#allocation6 + $0x1], 0 }
   0x4   :  { %13 = vsyncpa [#allocation4], 0 }
   0x5   :  { %15 = vsyncpa [#allocation4 + $0x1], 0  ;;  %s560_s9 = smov 0   ;;  %s562_s10 = smov 0  }
   0x6   :  { %s564_s11 = smov 0   ;;  %s566_s12 = smov 0  }
   0x7 LB: > { %s581_s13 = sadd.s32 4294967295, %s540_s12   ;;  %s341_s14 = sadd.s32 4294967294, %s540_s12   ;;  %s540_s12 = sphi %s566_s12, %s795_s12   ;;  %s536_s11 = sphi %s564_s11, %s794_s11   ;;  %s532_s10 = sphi %s562_s10, %s793_s10   ;;  %s528_s9 = sphi %s560_s9, %s792_s9  }
   0x8   : > { %s585_s15 = sadd.s32 1, %s540_s12   ;;  %s28_s16 = sadd.s32 1, %s536_s11 }
   0x9   : > { %s25_s17 = ssub.s32 %s540_s12, %s585_s15  ;;  %p35_p0 = scmp.ne.s32.totalorder %s536_s11, %s532_s10 }
   0xa   : > { %p26_p1 = scmp.eq.s32.totalorder %s25_s17, 0  ;;  %p36_p2 = scmp.eq.s32.totalorder %s540_s12, 0 }
   0xb   : > { %p41_p3 = scmp.ne.s32.totalorder %s532_s10, %s528_s9  ;;  %p42_p4 = scmp.eq.s32.totalorder %s581_s13, 0 }
   0xc   : > { %s597_s18 = scalar_select %p26_p1, %s536_s11, %s28_s16  }
   0xd   : > { %p599_p5 = por %p36_p2, %p35_p0  ;;  %p603_p6 = por %p42_p4, %p41_p3 }
   0xe   : > { %p91_p7 = scmp.eq.s32.totalorder %s581_s13, 1  ;;  %p97_p8 = scmp.eq.s32.totalorder %s341_s14, 1 }
   0xf   : > { %s780_s20 = scalar_select %p603_p6, 1, 0 }
  0x10   : > { %p372_p10 = scmp.lt.s32.totalorder %s540_s12, 2  ;;  %p610_p11 = por %p91_p7, %p35_p0 }
  0x11   : > { %p614_p12 = por %p97_p8, %p41_p3  ;;  %s619_s23 = sand.u32 1, %s536_s11  }
  0x12   : > { %s781_s21 = scalar_select %p610_p11, 1, 0 }
  0x13   : > { %s782_s22 = scalar_select %p614_p12, 1, 0 }
  0x14   : > { %s345_s24 = sshll.u32 %s540_s12, 7  ;;  %s344_s25 = sshll.u32 %s619_s23, 3 }
  0x15   : > { %s628_s28 = scalar_lea.hbm %s774_s0, %s345_s24  ;;  %s121_s29 = scalar_lea.vmem [#allocation2], %s344_s25 }
  0x16   : > { %s128_s30 = sshll.u32 %s121_s29, 4  ;;  %p634_p13 = pnand %p372_p10, %p599_p5  ;;  %s638_s30 = int_to_ptr.vmem [resolvable:$true] %s128_s30 }
  0x17   : > { %s118_s4 = scalar_lea.sflag [#allocation3], %s619_s23  ;;  %s410_s5 = scalar_lea.hbm %s628_s28, 128 }
  0x18   : > { %p411_p2 = scmp.ne.s32.totalorder %s628_s28, %s410_s5  ;;  %p412_p3 = pneg %p634_p13 }
  0x19   : > { %s415_s8 = scalar_lea.hbm %s774_s0, 256  ;;  %p416_p5 = scmp.lt.u32.totalorder %s628_s28, %s774_s0 }
  0x1a   : > { %p413_p4 = pnand %p412_p3, %p411_p2  ;;  %p417_p8 = scmp.lt.u32.totalorder %s415_s8, %s410_s5 }
  0x1b   : > { %p419_p9 = scmp.lt.u32.totalorder %s410_s5, %s628_s28 }
  0x1c   : > { %p414_p7 = pneg %p413_p4  ;;  %p418_p10 = por %p417_p8, %p416_p5 }
  0x1e   : > { %p420_p0 = por %p419_p9, %p418_p10 }
  0x20   : > { %p421_p1 = pnand %p420_p0, %p414_p7 }
  0x22   : > { %424 = shalt.err (!%p421_p1)
}
  0x23   : > { %s425_s17 = scalar_lea.vmem %s638_s30, 128  ;;  %s542_s19 = smov [#allocation2]  }
  0x24   : > { %p426_p2 = scmp.ne.s32.totalorder %s638_s30, %s425_s17  ;;  %s430_s26 = sshll.u32 %s542_s19, 4  ;;  %s431_s26 = int_to_ptr.vmem [resolvable:$false] %s430_s26 }
  0x25   : > { %s432_s27 = scalar_lea.vmem %s431_s26, 256  ;;  %p433_p11 = scmp.lt.s32.totalorder %s638_s30, %s431_s26 }
  0x26   : > { %p428_p4 = pnand %p426_p2, %p412_p3  ;;  %p434_p5 = scmp.lt.s32.totalorder %s432_s27, %s425_s17 }
  0x28   : > { %p429_p12 = pneg %p428_p4  ;;  %p435_p8 = por %p434_p5, %p433_p11 }
  0x2a   : > { %p436_p9 = pnand %p435_p8, %p429_p12 }
  0x2c   : > { %439 = shalt.err (!%p436_p9)
}
  0x2d   : > { %364 = dma.hbm_to_vmem [thread:$0]  (!%p634_p13), %s628_s28, 128, %s638_s30, %s118_s4  }
  0x2e   : > { %p784_p0 = scmp.lt.s32.totalorder %s540_s12, 3  ;;  %p785_p1 = scmp.ge.s32.totalorder %s540_s12, 1 }
  0x2f   : > { %s681_s7 = scalar_lea.hbm %s775_s1, %s345_s24  ;;  %s139_s8 = scalar_lea.vmem [#allocation5], %s344_s25 }
  0x30   : > { %p672_p7 = pnand %p785_p1, %p784_p0  ;;  %s146_s14 = sshll.u32 %s139_s8, 4  ;;  %s147_s14 = int_to_ptr.vmem [resolvable:$true] %s146_s14 }
  0x31   : > { %s136_s28 = scalar_lea.sflag [#allocation6], %s619_s23  ;;  %s440_s30 = scalar_lea.hbm %s681_s7, 128 }
  0x32   : > { %s786_s29 = scalar_select %p672_p7, 1, 0 }
  0x33   : > { %p441_p11 = scmp.ne.s32.totalorder %s681_s7, %s440_s30  ;;  %s445_s24 = scalar_lea.hbm %s775_s1, 256 }
  0x34   : > { %p446_p2 = scmp.lt.u32.totalorder %s681_s7, %s775_s1  ;;  %p447_p4 = scmp.lt.u32.totalorder %s445_s24, %s440_s30 }
  0x35   : > { %p443_p12 = pnand %p441_p11, %p412_p3  ;;  %p449_p8 = scmp.lt.u32.totalorder %s440_s30, %s681_s7 }
  0x36   : > { %p448_p5 = por %p447_p4, %p446_p2 }
  0x37   : > { %p444_p10 = pneg %p443_p12 }
  0x38   : > { %p450_p9 = por %p449_p8, %p448_p5 }
  0x3a   : > { %p451_p0 = pnand %p450_p9, %p444_p10 }
  0x3c   : > { %454 = shalt.err (!%p451_p0)
}
  0x3d   : > { %s455_s23 = scalar_lea.vmem %s147_s14, 128  ;;  %s543_s25 = smov [#allocation5]  }
  0x3e   : > { %p456_p1 = scmp.ne.s32.totalorder %s147_s14, %s455_s23  ;;  %s460_s26 = sshll.u32 %s543_s25, 4  ;;  %s461_s26 = int_to_ptr.vmem [resolvable:$false] %s460_s26 }
  0x3f   : > { %s462_s27 = scalar_lea.vmem %s461_s26, 256  ;;  %p463_p6 = scmp.lt.s32.totalorder %s147_s14, %s461_s26 }
  0x40   : > { %p458_p11 = pnand %p456_p1, %p412_p3  ;;  %p464_p7 = scmp.lt.s32.totalorder %s462_s27, %s455_s23 }
  0x42   : > { %p459_p12 = pneg %p458_p11  ;;  %p465_p2 = por %p464_p7, %p463_p6 }
  0x44   : > { %p466_p4 = pnand %p465_p2, %p459_p12 }
  0x46   : > { %469 = shalt.err (!%p466_p4)
}
  0x47   : > { %367 = dma.hbm_to_vmem [thread:$0]  (!%p634_p13), %s681_s7, 128, %s147_s14, %s136_s28  }
  0x48   : > { %p787_p10 = scmp.ne.s32.totalorder %s786_s29, 0 }
  0x49   : > { %s708_s5 = sand.u32 (!%p787_p10), 1, %s532_s10   ;;  %p788_p3 = scmp.ne.s32.totalorder (!%p787_p10), %s780_s20, 0 }
  0x4a   : > { %155 = sbr.rel (%p787_p10) target bundleno = 581 (0x245), region = 28  ;;  %s349_s6 = sshll.u32 (!%p787_p10), %s708_s5, 3 }
  0x4b   : > { %s158_s8 = scalar_lea.sflag (!%p787_p10), [#allocation3], %s708_s5  ;;  %s161_s30 = scalar_lea.vmem (!%p787_p10), [#allocation2], %s349_s6 }
  0x51   : > { %515 = dma.done.wait (%p788_p3), %s158_s8, 128  }
  0x52   : > { %517 = vsyncadd (%p788_p3), %s158_s8, 4294967168  ;;  %s167_s3 = scalar_lea.sflag [#allocation6], %s708_s5  ;;  %s170_s7 = scalar_lea.vmem [#allocation5], %s349_s6 }
  0x53   : > { %519 = dma.done.wait (%p788_p3), %s167_s3, 128  }
  0x54   : > { %521 = vsyncadd (%p788_p3), %s167_s3, 4294967168  ;;  %v195_v0 = vld [vmem:[%s161_s30] sm:$0xff]  ;;  %v196_v1 = vld [vmem:[%s170_s7] sm:$0xff]  ;;  %vm200_vm0 = vcmask 261120   ;;  %s352_s20 = sshll.u32 %s581_s13, 4  ;;  %s194_s29 = scalar_lea.vmem [#allocation7], %s708_s5 }
  0x55   : > { %v197_v2 = vsub.f32 %v195_v0, %v196_v1  ;;  %s252_s14 = sshll.u32 %s194_s29, 4  ;;  %vm235_vm1 = vcmask 7168   ;;  %vm237_vm2 = vcmask 8192   ;;  %s730_s16 = scalar_lea.hbm %s776_s2, %s352_s20  ;;  %s732_s14 = int_to_ptr.vmem [resolvable:$true] %s252_s14 }
  0x56   : > { %s240_s24 = scalar_lea.sflag [#allocation4], %s708_s5  ;;  %s470_s13 = scalar_lea.vmem %s732_s14, 16 }
  0x57   : > { %v198_v3 = vand.u32 2147483647, %v197_v2  ;;  %p471_p6 = scmp.ne.s32.totalorder %s732_s14, %s470_s13  ;;  %p789_p13 = scmp.ne.s32.totalorder %s781_s21, 0 }
  0x58   : > { %s544_s17 = smov [#allocation7]  }
  0x59   : > { %v199_v4 = vmul.f32 -1.0, %v198_v3  ;;  %p472_p7 = pnand %p471_p6, %p789_p13  ;;  %s474_s19 = sshll.u32 %s544_s17, 4  ;;  %s475_s19 = int_to_ptr.vmem [resolvable:$false] %s474_s19 }
  0x5a   : > { %s476_s23 = scalar_lea.vmem %s475_s19, 32  ;;  %p477_p8 = scmp.lt.s32.totalorder %s732_s14, %s475_s19 }
  0x5b   : > { %v201_v5 = vsel %vm200_vm0, %v199_v4, -inf  ;;  %p473_p5 = pneg %p472_p7  ;;  %p478_p9 = scmp.lt.s32.totalorder %s476_s23, %s470_s13 }
  0x5c   : > { %202 = vmax.xlane.f32.xlu0 %v201_v5 }
  0x5d   : > { %p479_p0 = por %p478_p9, %p477_p8 }
  0x5f   : > { %p480_p1 = pnand %p479_p0, %p473_p5 }
  0xe9   : > { %v203_v6 = vpop.xlane.xlu0 %202 }
  0xea   : > { %v204_v7 = vsub.f32 %v199_v4, %v203_v6 }
  0xec   : > { %v205_v8 = vmul.f32 1.442695, %v204_v7 }
  0xee   : > { %406 = vpow2.f32 %v205_v8 }
  0xf8   : > { %v407_v9 = vpop.eup %406 }
  0xf9   : > { %v207_v10 = vsel %vm200_vm0, %v407_v9, 0.0  ;;  %v218_v11 = vmul.f32 %v407_v9, %v198_v3 }
  0xfa   : > { %208 = vadd.xlane.f32.xlu0 %v207_v10 }
  0xfb   : > { %v219_v12 = vsel %vm200_vm0, %v218_v11, 0.0 }
  0xfc   : > { %220 = vadd.xlane.f32.xlu1 %v219_v12 }
 0x187   : > { %v209_v13 = vpop.xlane.xlu0 %208 }
 0x188   : > { %408 = vrcp.f32 %v209_v13 }
 0x189   : > { %v221_v20 = vpop.xlane.xlu1 %220 }
 0x192   : > { %v409_v14 = vpop.eup %408 }
 0x193   : > { %v211_v15 = vmul.f32 %v409_v14, %v407_v9  ;;  %v222_v21 = vmul.f32 %v409_v14, %v221_v20 }
 0x195   : > { %v351_v16 = vadd.f32 -1.0, %v211_v15  ;;  %v229_v22 = vrot.slane %v222_v21, 4 }
 0x197   : > { %v213_v17 = vmul.f32 %v351_v16, %v195_v0  ;;  %v230_v23 = vadd.f32 %v229_v22, %v222_v21 }
 0x199   : > { %v214_v18 = vmul.f32 %v213_v17, %v213_v17  ;;  %v231_v24 = vrot.slane %v230_v23, 2 }
 0x19b   : > { %v215_v19 = vsel %vm200_vm0, %v214_v18, 0.0  ;;  %v232_v27 = vadd.f32 %v231_v24, %v230_v23 }
 0x19c   : > { %216 = vadd.xlane.f32.xlu1 %v215_v19 }
 0x19d   : > { %v233_v30 = vrot.slane %v232_v27, 1 }
 0x19f   : > { %v234_v33 = vadd.f32 %v233_v30, %v232_v27 }
 0x229   : > { %v217_v25 = vpop.xlane.xlu1 %216 }
 0x22a   : > { %v223_v26 = vrot.slane %v217_v25, 4 }
 0x22c   : > { %v224_v28 = vadd.f32 %v223_v26, %v217_v25 }
 0x22e   : > { %v225_v29 = vrot.slane %v224_v28, 2 }
 0x230   : > { %v226_v31 = vadd.f32 %v225_v29, %v224_v28 }
 0x232   : > { %v227_v32 = vrot.slane %v226_v31, 1 }
 0x234   : > { %v228_v34 = vadd.f32 %v227_v32, %v226_v31 }
 0x236   : > { %v236_v35 = vsel %vm235_vm1, %v228_v34, %v234_v33 }
 0x237   : > { %238 = vst.msk [vmem:[%s194_s29] sm:$0x1] %vm237_vm2, %v236_v35 }
 0x238   : > { %483 = shalt.err (!%p480_p1)
}
 0x239   : > { %s484_s25 = scalar_lea.hbm %s730_s16, 16  ;;  %s488_s5 = scalar_lea.hbm %s776_s2, 32 }
 0x23a   : > { %p485_p11 = scmp.ne.s32.totalorder %s730_s16, %s484_s25  ;;  %p489_p4 = scmp.lt.u32.totalorder %s730_s16, %s776_s2 }
 0x23b   : > { %p490_p10 = scmp.lt.u32.totalorder %s488_s5, %s484_s25  ;;  %p492_p6 = scmp.lt.u32.totalorder %s484_s25, %s730_s16 }
 0x23c   : > { %p486_p12 = pnand %p485_p11, %p789_p13 }
 0x23d   : > { %p491_p3 = por %p490_p10, %p489_p4 }
 0x23e   : > { %p487_p2 = pneg %p486_p12 }
 0x23f   : > { %p493_p7 = por %p492_p6, %p491_p3 }
 0x241   : > { %p494_p5 = pnand %p493_p7, %p487_p2 }
 0x243   : > { %497 = shalt.err (!%p494_p5)
}
 0x244   : > { %359 = dma.vmem_to_hbm [thread:$0]  (%p789_p13), %s732_s14, 16, %s730_s16, %s240_s24  }
 0x245 PF: > { %s264_s30 = sand.u32 1, %s528_s9   ;;  %p790_p8 = scmp.ne.s32.totalorder %s782_s22, 0 }
 0x246   : > { %p791_p9 = scmp.ge.s32.totalorder %s540_s12, 2  ;;  %s265_s3 = scalar_lea.sflag [#allocation4], %s264_s30 }
 0x248   : > { %p369_p0 = pnand %p791_p9, %p790_p8 }
 0x24a   : > { %523 = dma.done.wait (!%p369_p0), %s265_s3, 16  }
 0x24b   : > { %525 = vsyncadd (!%p369_p0), %s265_s3, 4294967280  ;;  %p18_p1 = scmp.ge.s32.totalorder %s585_s15, 4   ;;  %s792_s9 = smov %s532_s10 }
 0x24c   : > { %s793_s10 = smov %s536_s11  ;;  %s794_s11 = smov %s597_s18 }
 0x24d   : > { %s795_s12 = smov %s585_s15  ;;  %20 = sbr.rel (!%p18_p1) target bundleno = 7 (0x7), region = 86 }
 0x254   :  { %269 = vsyncpa [#allocation3], 1 }
 0x255   :  { %271 = vsyncpa [#allocation3 + $0x1], 1 }
 0x256   :  { %272 = vsyncpa [#allocation6], 1 }
 0x257   :  { %274 = vsyncpa [#allocation6 + $0x1], 1 }
 0x258   :  { %275 = vsyncpa [#allocation4], 1 }
 0x259   :  { %277 = vsyncpa [#allocation4 + $0x1], 1 }

</bundles_post_ra>
